<compile_context>
chip_gen: v6e
topology: v6e:2x2x1
jax: 0.10.0
libtpu: 0.0.40
codegen_flags: <defaults>
</compile_context>

<pallas_src>
import functools

import jax
import jax.numpy as jnp
import numpy as np
from jax import lax
from jax.experimental import pallas as pl
from jax.experimental.pallas import tpu as pltpu

_O_PAD = 128  # lane-dense padding of the linear output dim
_G_PAD = 128  # lane-dense padding of the packed 3-gate dim (needs 3*H <= 128)


# ----------------------------------------------------------------------------
# Pallas kernel: whole GRU forward in one invocation
# ----------------------------------------------------------------------------
def _tennis_gru_kernel(x_ref,        # (T*Bp, D)      time-major, batch-padded, f32
                       wih_ref,      # (D, G_PAD)     [Wir|Wiz|Win|0]^T  (matmul dtype)
                       whh_ref,      # (H, G_PAD)     [Whr|Whz|Whn|0]^T  (matmul dtype)
                       bcat_ref,     # (1, G_PAD)     [b_r|b_z|b_in|0]   (f32)
                       bhn_ref,      # (1, H)         b_hh_n (stays inside reset product)
                       wlin_ref,     # (H, O_PAD)     padded Linear weight (matmul dtype)
                       blin_ref,     # (1, O_PAD)     padded Linear bias (f32)
                       out_ref,      # (T*Bp, O_PAD)
                       gx_scr,       # (T*Bp, G_PAD)  packed input projections
                       h_all_scr,    # (T*Bp, H)      all hidden states
                       *, seq_len, b_pad, hidden_dim):
    H = hidden_dim
    wd = whh_ref.dtype  # matmul dtype (bf16 for the perf variant, f32 for checking)

    # ---- prologue: packed input projections for every timestep (off the
    #      recurrent critical path): one (T*Bp, D) @ (D, 128) matmul.
    x_all = x_ref[...].astype(wd)
    gx_scr[...] = jnp.dot(x_all, wih_ref[...],
                          preferred_element_type=jnp.float32) + bcat_ref[...]

    whh = whh_ref[...]                                      # hoisted out of the loop
    bhn = jnp.broadcast_to(bhn_ref[...], (b_pad, H))        # hoisted broadcast

    # ---- serial recurrence: 1 MXU matmul + 1 lane-dense load + 2 EUP passes / step
    def step(t, h_prev):
        off = pl.multiple_of(t * b_pad, b_pad)
        gx = gx_scr[pl.ds(off, b_pad), :]                   # (Bp, 128) single vld
        gh = jnp.dot(h_prev.astype(wd), whh,
                     preferred_element_type=jnp.float32)    # (Bp, 128) single MXU push
        sig = jax.nn.sigmoid(gx + gh)                       # r & z in ONE EUP pass
        r = sig[:, 0:H]
        z = sig[:, H:2 * H]
        n = jnp.tanh(gx[:, 2 * H:3 * H] + r * (gh[:, 2 * H:3 * H] + bhn))
        h_new = n + z * (h_prev - n)                        # fused combine
        h_all_scr[pl.ds(off, b_pad), :] = h_new
        return h_new

    h0 = jnp.zeros((b_pad, H), jnp.float32)
    unroll = True if seq_len <= 16 else 8                   # bounded unroll for long T
    lax.fori_loop(0, seq_len, step, h0, unroll=unroll)

    # ---- epilogue: one lane-dense Linear + sigmoid over all (t, b) at once
    logits = jnp.dot(h_all_scr[...].astype(wd), wlin_ref[...],
                     preferred_element_type=jnp.float32) + blin_ref[...]
    out_ref[...] = jax.nn.sigmoid(logits)


# ----------------------------------------------------------------------------
# Wrapper
# ----------------------------------------------------------------------------
@functools.partial(jax.jit, static_argnames=("output_dim",))
def tennis_gru_forward(x, prematch_probs, kp, output_dim=1):
    """x: (batch, seq, input_dim); prematch_probs: (batch, 1, 14)."""
    B, T, _ = x.shape
    pm = jnp.broadcast_to(prematch_probs, (B, T, prematch_probs.shape[-1]))
    xcat = jnp.concatenate([x, pm], axis=2)                 # (B, T, D)
    xseq = jnp.transpose(xcat, (1, 0, 2))                   # (T, B, D) time-major
    D = xseq.shape[-1]
    H = kp["whh_cat"].shape[0]

    b_pad = ((B + 7) // 8) * 8                              # pad batch to 8 sublanes
    xseq = jnp.pad(xseq, ((0, 0), (0, b_pad - B), (0, 0)))
    x_flat = xseq.reshape(T * b_pad, D)

    kernel = functools.partial(_tennis_gru_kernel,
                               seq_len=T, b_pad=b_pad, hidden_dim=H)
    full2 = lambda i: (0, 0)

    out_pad = pl.pallas_call(
        kernel,
        out_shape=jax.ShapeDtypeStruct((T * b_pad, _O_PAD), jnp.float32),
        grid_spec=pltpu.PrefetchScalarGridSpec(
            num_scalar_prefetch=0,
            grid=(1,),                                      # single invocation
            in_specs=[
                pl.BlockSpec((T * b_pad, D), full2),        # x
                pl.BlockSpec((D, _G_PAD), full2),           # wih_cat
                pl.BlockSpec((H, _G_PAD), full2),           # whh_cat
                pl.BlockSpec((1, _G_PAD), full2),           # b_cat
                pl.BlockSpec((1, H), full2),                # b_hn
                pl.BlockSpec((H, _O_PAD), full2),           # wlin_t (padded)
                pl.BlockSpec((1, _O_PAD), full2),           # blin   (padded)
            ],
            out_specs=pl.BlockSpec((T * b_pad, _O_PAD), full2),
            scratch_shapes=[
                pltpu.VMEM((T * b_pad, _G_PAD), jnp.float32),  # packed gx
                pltpu.VMEM((T * b_pad, H), jnp.float32),       # all h_t
            ],
        ),
        compiler_params=pltpu.CompilerParams(
            dimension_semantics=("arbitrary",)),
    )(x_flat,
      kp["wih_cat"], kp["whh_cat"], kp["b_cat"], kp["b_hn"],
      kp["wlin_t"], kp["blin"])

    out = out_pad.reshape(T, b_pad, _O_PAD)[:, :B, :output_dim]  # (T, B, O)
    # TODO(synk): predict_mask=True tuple output (y_pred, mask) not wired here;
    #             the kernel already supports output_dim=2 via the padded linear.
    return out.reshape(-1)                                  # matches out.view(-1)


# ----------------------------------------------------------------------------
# Pure-JAX reference (PyTorch nn.GRU semantics) for the correctness check
# ----------------------------------------------------------------------------
def tennis_gru_reference(x, prematch_probs, raw):
    B, T, _ = x.shape
    pm = jnp.broadcast_to(prematch_probs, (B, T, prematch_probs.shape[-1]))
    xseq = jnp.transpose(jnp.concatenate([x, pm], axis=2), (1, 0, 2))
    w_ih, w_hh = raw["w_ih"], raw["w_hh"]
    b_ih, b_hh = raw["b_ih"], raw["b_hh"]
    H = w_hh.shape[1]
    h = jnp.zeros((B, H), jnp.float32)
    outs = []
    for t in range(T):
        gi = xseq[t] @ w_ih.T + b_ih                        # (B, 3H)  [r|z|n]
        gh = h @ w_hh.T + b_hh                              # (B, 3H)
        r = jax.nn.sigmoid(gi[:, :H] + gh[:, :H])
        z = jax.nn.sigmoid(gi[:, H:2 * H] + gh[:, H:2 * H])
        n = jnp.tanh(gi[:, 2 * H:] + r * gh[:, 2 * H:])
        h = (1.0 - z) * n + z * h
        outs.append(jax.nn.sigmoid(h @ raw["w_lin"].T + raw["b_lin"]))
    return jnp.stack(outs, axis=0).reshape(-1)


# ----------------------------------------------------------------------------
# Deterministic parameter init (shapes match nn.GRU / nn.Linear) + kernel layout
# ----------------------------------------------------------------------------
def init_raw_params(key, gru_input_dim, hidden_dim, output_dim):
    D, H, O = gru_input_dim, hidden_dim, output_dim
    ks = jax.random.split(key, 6)
    s = 1.0 / np.sqrt(H)
    return {
        "w_ih": jax.random.uniform(ks[0], (3 * H, D), jnp.float32, -s, s),
        "w_hh": jax.random.uniform(ks[1], (3 * H, H), jnp.float32, -s, s),
        "b_ih": jax.random.uniform(ks[2], (3 * H,), jnp.float32, -s, s),
        "b_hh": jax.random.uniform(ks[3], (3 * H,), jnp.float32, -s, s),
        "w_lin": jax.random.uniform(ks[4], (O, H), jnp.float32, -s, s),
        "b_lin": jax.random.uniform(ks[5], (O,), jnp.float32, -s, s),
    }


def prepare_kernel_params(raw, matmul_dtype=jnp.bfloat16):
    """Lane-pack [r|z|n] gate weights into single 128-lane tiles, fuse biases
    where legal (b_r, b_z fully fused; b_in fused into gx; b_hn kept separate
    so it stays inside the reset product), pad the output linear to 128 lanes,
    and cast matmul operands to the requested MXU dtype."""
    w_ih, w_hh = raw["w_ih"], raw["w_hh"]
    b_ih, b_hh = raw["b_ih"], raw["b_hh"]
    H = w_hh.shape[1]
    O = raw["w_lin"].shape[0]
    assert 3 * H <= _G_PAD, "gate packing assumes 3*hidden_dim <= 128 lanes"

    wih_cat = jnp.zeros((w_ih.shape[1], _G_PAD), jnp.float32).at[:, :3 * H].set(w_ih.T)
    whh_cat = jnp.zeros((H, _G_PAD), jnp.float32).at[:, :3 * H].set(w_hh.T)

    b_cat = jnp.zeros((1, _G_PAD), jnp.float32)
    b_cat = b_cat.at[:, 0 * H:1 * H].set((b_ih[0 * H:1 * H] + b_hh[0 * H:1 * H])[None, :])
    b_cat = b_cat.at[:, 1 * H:2 * H].set((b_ih[1 * H:2 * H] + b_hh[1 * H:2 * H])[None, :])
    b_cat = b_cat.at[:, 2 * H:3 * H].set(b_ih[2 * H:3 * H][None, :])  # b_in (outside reset)

    wlin_t = jnp.zeros((H, _O_PAD), jnp.float32).at[:, :O].set(raw["w_lin"].T)
    blin = jnp.zeros((1, _O_PAD), jnp.float32).at[:, :O].set(raw["b_lin"][None, :])

    return {
        "wih_cat": wih_cat.astype(matmul_dtype),
        "whh_cat": whh_cat.astype(matmul_dtype),
        "b_cat": b_cat,
        "b_hn": b_hh[2 * H:3 * H][None, :],                 # stays INSIDE reset product
        "wlin_t": wlin_t.astype(matmul_dtype),
        "blin": blin,
    }


if __name__ == "__main__":
    # Small config: input_dim=2 -> GRU input D = 2 + 14 = 16
    input_dim, hidden_dim, batch_size, seq_len = 2, 32, 4, 8
    predict_mask = False
    output_dim = 2 if predict_mask else 1
    # NOTE: nn.GRU dropout=0.1 is a no-op in the forward with num_layers=1.

    key = jax.random.PRNGKey(0)
    k_x, k_pm, k_p = jax.random.split(key, 3)

    x = jax.random.normal(k_x, (batch_size, seq_len, input_dim), jnp.float32)
    prematch_probs = jax.random.uniform(k_pm, (batch_size, 1, 14), jnp.float32)

    raw = init_raw_params(k_p, input_dim + 14, hidden_dim, output_dim)
    ref = tennis_gru_reference(x, prematch_probs, raw)

    # 1) f32-MXU variant: tight correctness check against the torch-semantics reference.
    kp_f32 = prepare_kernel_params(raw, matmul_dtype=jnp.float32)
    out_f32 = jax.block_until_ready(
        tennis_gru_forward(x, prematch_probs, kp_f32, output_dim=output_dim))
    np.testing.assert_allclose(np.asarray(out_f32), np.asarray(ref),
                               rtol=1e-4, atol=1e-4)

    # 2) bf16-MXU variant (performance default): looser tolerance per review.
    kp_bf16 = prepare_kernel_params(raw, matmul_dtype=jnp.bfloat16)
    out_bf16 = jax.block_until_ready(
        tennis_gru_forward(x, prematch_probs, kp_bf16, output_dim=output_dim))
    np.testing.assert_allclose(np.asarray(out_bf16), np.asarray(ref),
                               rtol=2e-2, atol=1e-2)

    assert out_f32.shape == (seq_len * batch_size,)
    assert out_bf16.shape == (seq_len * batch_size,)

    print("KERNEL_OK")
</pallas_src>

<mosaic_0001>
module attributes {stable_mosaic.version = 11 : i64} {
  func.func @_tennis_gru_kernel(%arg0: i32, %arg1: memref<64x16xf32, #tpu.memory_space<vmem>>, %arg2: memref<16x128xf32, #tpu.memory_space<vmem>>, %arg3: memref<32x128xf32, #tpu.memory_space<vmem>>, %arg4: memref<1x128xf32, #tpu.memory_space<vmem>>, %arg5: memref<1x32xf32, #tpu.memory_space<vmem>>, %arg6: memref<32x128xf32, #tpu.memory_space<vmem>>, %arg7: memref<1x128xf32, #tpu.memory_space<vmem>>, %arg8: memref<64x128xf32, #tpu.memory_space<vmem>>, %arg9: memref<64x128xf32, #tpu.memory_space<vmem>>, %arg10: memref<64x32xf32, #tpu.memory_space<vmem>>) attributes {dimension_semantics = [#tpu.dimension_semantics<arbitrary>], iteration_bounds = array<i64: 1>, scalar_prefetch = 0 : i64, scratch_operands = 2 : i64, tpu.core_type = #tpu.core_type<tc>, window_params = [{pipeline_mode = #tpu.pipeline_mode<synchronous>, transform_indices = @transform_0, window_bounds = array<i64: 64, 16>}, {pipeline_mode = #tpu.pipeline_mode<synchronous>, transform_indices = @transform_1, window_bounds = array<i64: 16, 128>}, {pipeline_mode = #tpu.pipeline_mode<synchronous>, transform_indices = @transform_2, window_bounds = array<i64: 32, 128>}, {pipeline_mode = #tpu.pipeline_mode<synchronous>, transform_indices = @transform_3, window_bounds = array<i64: 1, 128>}, {pipeline_mode = #tpu.pipeline_mode<synchronous>, transform_indices = @transform_4, window_bounds = array<i64: 1, 32>}, {pipeline_mode = #tpu.pipeline_mode<synchronous>, transform_indices = @transform_5, window_bounds = array<i64: 32, 128>}, {pipeline_mode = #tpu.pipeline_mode<synchronous>, transform_indices = @transform_6, window_bounds = array<i64: 1, 128>}, {pipeline_mode = #tpu.pipeline_mode<synchronous>, transform_indices = @transform_7, window_bounds = array<i64: 64, 128>}]} {
    %c0 = arith.constant 0 : index
    %c0_0 = arith.constant 0 : index
    %0 = vector.load %arg1[%c0, %c0_0] : memref<64x16xf32, #tpu.memory_space<vmem>>, vector<64x16xf32>
    %c0_1 = arith.constant 0 : index
    %c0_2 = arith.constant 0 : index
    %1 = vector.load %arg2[%c0_1, %c0_2] : memref<16x128xf32, #tpu.memory_space<vmem>>, vector<16x128xf32>
    %cst = arith.constant dense<0.000000e+00> : vector<64x128xf32>
    %2 = tpu.matmul %0, %1, %cst {dimension_numbers = #tpu.dot_dimension_numbers<[1], [0], [0], [1], [0, 0, 1, 1], [], []>} : vector<64x16xf32>, vector<16x128xf32>, vector<64x128xf32> -> vector<64x128xf32>
    %c0_3 = arith.constant 0 : index
    %c0_4 = arith.constant 0 : index
    %3 = vector.load %arg4[%c0_3, %c0_4] : memref<1x128xf32, #tpu.memory_space<vmem>>, vector<1x128xf32>
    %4 = vector.broadcast %3 : vector<1x128xf32> to vector<64x128xf32>
    %5 = arith.addf %2, %4 : vector<64x128xf32>
    %c0_5 = arith.constant 0 : index
    %c0_6 = arith.constant 0 : index
    %6 = vector.load %arg9[%c0_5, %c0_6] : memref<64x128xf32, #tpu.memory_space<vmem>>, vector<64x128xf32>
    tpu.vector_store %arg9[%c0_5, %c0_6], %5 {strides = array<i32>} : memref<64x128xf32, #tpu.memory_space<vmem>>, vector<64x128xf32>,
    %c0_7 = arith.constant 0 : index
    %c0_8 = arith.constant 0 : index
    %7 = vector.load %arg3[%c0_7, %c0_8] : memref<32x128xf32, #tpu.memory_space<vmem>>, vector<32x128xf32>
    %c0_9 = arith.constant 0 : index
    %c0_10 = arith.constant 0 : index
    %8 = vector.load %arg5[%c0_9, %c0_10] : memref<1x32xf32, #tpu.memory_space<vmem>>, vector<1x32xf32>
    %9 = vector.shape_cast %8 : vector<1x32xf32> to vector<1x32xf32>
    %10 = vector.broadcast %9 : vector<1x32xf32> to vector<8x32xf32>
    %cst_11 = arith.constant 0.000000e+00 : f32
    %11 = vector.broadcast %cst_11 : f32 to vector<8x32xf32>
    %c0_i32 = arith.constant 0 : i32
    %c8_i32 = arith.constant 8 : i32
    %12 = arith.muli %c0_i32, %c8_i32 : i32
    %13 = tpu.assume_multiple %12, 8 : i32
    %14 = arith.index_cast %13 : i32 to index
    %c0_12 = arith.constant 0 : index
    %15 = vector.load %arg9[%14, %c0_12] : memref<64x128xf32, #tpu.memory_space<vmem>>, vector<8x128xf32>
    %cst_13 = arith.constant dense<0.000000e+00> : vector<8x128xf32>
    %16 = tpu.matmul %11, %7, %cst_13 {dimension_numbers = #tpu.dot_dimension_numbers<[1], [0], [0], [1], [0, 0, 1, 1], [], []>} : vector<8x32xf32>, vector<32x128xf32>, vector<8x128xf32> -> vector<8x128xf32>
    %17 = arith.addf %15, %16 : vector<8x128xf32>
    %18 = arith.negf %17 : vector<8x128xf32>
    %19 = math.exp %18 : vector<8x128xf32>
    %cst_14 = arith.constant 1.000000e+00 : f32
    %20 = vector.broadcast %cst_14 : f32 to vector<8x128xf32>
    %21 = arith.addf %20, %19 : vector<8x128xf32>
    %22 = arith.divf %20, %21 : vector<8x128xf32>
    %23 = vector.extract_strided_slice %22 {offsets = [0, 0], sizes = [8, 32], strides = [1, 1]} : vector<8x128xf32> to vector<8x32xf32>
    %24 = vector.extract_strided_slice %22 {offsets = [0, 32], sizes = [8, 32], strides = [1, 1]} : vector<8x128xf32> to vector<8x32xf32>
    %25 = vector.extract_strided_slice %15 {offsets = [0, 64], sizes = [8, 32], strides = [1, 1]} : vector<8x128xf32> to vector<8x32xf32>
    %26 = vector.extract_strided_slice %16 {offsets = [0, 64], sizes = [8, 32], strides = [1, 1]} : vector<8x128xf32> to vector<8x32xf32>
    %27 = arith.addf %26, %10 : vector<8x32xf32>
    %28 = arith.mulf %23, %27 : vector<8x32xf32>
    %29 = arith.addf %25, %28 : vector<8x32xf32>
    %30 = math.tanh %29 : vector<8x32xf32>
    %31 = arith.subf %11, %30 : vector<8x32xf32>
    %32 = arith.mulf %24, %31 : vector<8x32xf32>
    %33 = arith.addf %30, %32 : vector<8x32xf32>
    %34 = arith.index_cast %13 : i32 to index
    %c0_15 = arith.constant 0 : index
    %35 = vector.load %arg10[%34, %c0_15] : memref<64x32xf32, #tpu.memory_space<vmem>>, vector<8x32xf32>
    tpu.vector_store %arg10[%34, %c0_15], %33 {strides = array<i32>} : memref<64x32xf32, #tpu.memory_space<vmem>>, vector<8x32xf32>,
    %c1_i32 = arith.constant 1 : i32
    %c8_i32_16 = arith.constant 8 : i32
    %36 = arith.muli %c1_i32, %c8_i32_16 : i32
    %37 = tpu.assume_multiple %36, 8 : i32
    %38 = arith.index_cast %37 : i32 to index
    %c0_17 = arith.constant 0 : index
    %39 = vector.load %arg9[%38, %c0_17] : memref<64x128xf32, #tpu.memory_space<vmem>>, vector<8x128xf32>
    %cst_18 = arith.constant dense<0.000000e+00> : vector<8x128xf32>
    %40 = tpu.matmul %33, %7, %cst_18 {dimension_numbers = #tpu.dot_dimension_numbers<[1], [0], [0], [1], [0, 0, 1, 1], [], []>} : vector<8x32xf32>, vector<32x128xf32>, vector<8x128xf32> -> vector<8x128xf32>
    %41 = arith.addf %39, %40 : vector<8x128xf32>
    %42 = arith.negf %41 : vector<8x128xf32>
    %43 = math.exp %42 : vector<8x128xf32>
    %cst_19 = arith.constant 1.000000e+00 : f32
    %44 = vector.broadcast %cst_19 : f32 to vector<8x128xf32>
    %45 = arith.addf %44, %43 : vector<8x128xf32>
    %46 = arith.divf %44, %45 : vector<8x128xf32>
    %47 = vector.extract_strided_slice %46 {offsets = [0, 0], sizes = [8, 32], strides = [1, 1]} : vector<8x128xf32> to vector<8x32xf32>
    %48 = vector.extract_strided_slice %46 {offsets = [0, 32], sizes = [8, 32], strides = [1, 1]} : vector<8x128xf32> to vector<8x32xf32>
    %49 = vector.extract_strided_slice %39 {offsets = [0, 64], sizes = [8, 32], strides = [1, 1]} : vector<8x128xf32> to vector<8x32xf32>
    %50 = vector.extract_strided_slice %40 {offsets = [0, 64], sizes = [8, 32], strides = [1, 1]} : vector<8x128xf32> to vector<8x32xf32>
    %51 = arith.addf %50, %10 : vector<8x32xf32>
    %52 = arith.mulf %47, %51 : vector<8x32xf32>
    %53 = arith.addf %49, %52 : vector<8x32xf32>
    %54 = math.tanh %53 : vector<8x32xf32>
    %55 = arith.subf %33, %54 : vector<8x32xf32>
    %56 = arith.mulf %48, %55 : vector<8x32xf32>
    %57 = arith.addf %54, %56 : vector<8x32xf32>
    %58 = arith.index_cast %37 : i32 to index
    %c0_20 = arith.constant 0 : index
    %59 = vector.load %arg10[%58, %c0_20] : memref<64x32xf32, #tpu.memory_space<vmem>>, vector<8x32xf32>
    tpu.vector_store %arg10[%58, %c0_20], %57 {strides = array<i32>} : memref<64x32xf32, #tpu.memory_space<vmem>>, vector<8x32xf32>,
    %c2_i32 = arith.constant 2 : i32
    %c8_i32_21 = arith.constant 8 : i32
    %60 = arith.muli %c2_i32, %c8_i32_21 : i32
    %61 = tpu.assume_multiple %60, 8 : i32
    %62 = arith.index_cast %61 : i32 to index
    %c0_22 = arith.constant 0 : index
    %63 = vector.load %arg9[%62, %c0_22] : memref<64x128xf32, #tpu.memory_space<vmem>>, vector<8x128xf32>
    %cst_23 = arith.constant dense<0.000000e+00> : vector<8x128xf32>
    %64 = tpu.matmul %57, %7, %cst_23 {dimension_numbers = #tpu.dot_dimension_numbers<[1], [0], [0], [1], [0, 0, 1, 1], [], []>} : vector<8x32xf32>, vector<32x128xf32>, vector<8x128xf32> -> vector<8x128xf32>
    %65 = arith.addf %63, %64 : vector<8x128xf32>
    %66 = arith.negf %65 : vector<8x128xf32>
    %67 = math.exp %66 : vector<8x128xf32>
    %cst_24 = arith.constant 1.000000e+00 : f32
    %68 = vector.broadcast %cst_24 : f32 to vector<8x128xf32>
    %69 = arith.addf %68, %67 : vector<8x128xf32>
    %70 = arith.divf %68, %69 : vector<8x128xf32>
    %71 = vector.extract_strided_slice %70 {offsets = [0, 0], sizes = [8, 32], strides = [1, 1]} : vector<8x128xf32> to vector<8x32xf32>
    %72 = vector.extract_strided_slice %70 {offsets = [0, 32], sizes = [8, 32], strides = [1, 1]} : vector<8x128xf32> to vector<8x32xf32>
    %73 = vector.extract_strided_slice %63 {offsets = [0, 64], sizes = [8, 32], strides = [1, 1]} : vector<8x128xf32> to vector<8x32xf32>
    %74 = vector.extract_strided_slice %64 {offsets = [0, 64], sizes = [8, 32], strides = [1, 1]} : vector<8x128xf32> to vector<8x32xf32>
    %75 = arith.addf %74, %10 : vector<8x32xf32>
    %76 = arith.mulf %71, %75 : vector<8x32xf32>
    %77 = arith.addf %73, %76 : vector<8x32xf32>
    %78 = math.tanh %77 : vector<8x32xf32>
    %79 = arith.subf %57, %78 : vector<8x32xf32>
    %80 = arith.mulf %72, %79 : vector<8x32xf32>
    %81 = arith.addf %78, %80 : vector<8x32xf32>
    %82 = arith.index_cast %61 : i32 to index
    %c0_25 = arith.constant 0 : index
    %83 = vector.load %arg10[%82, %c0_25] : memref<64x32xf32, #tpu.memory_space<vmem>>, vector<8x32xf32>
    tpu.vector_store %arg10[%82, %c0_25], %81 {strides = array<i32>} : memref<64x32xf32, #tpu.memory_space<vmem>>, vector<8x32xf32>,
    %c3_i32 = arith.constant 3 : i32
    %c8_i32_26 = arith.constant 8 : i32
    %84 = arith.muli %c3_i32, %c8_i32_26 : i32
    %85 = tpu.assume_multiple %84, 8 : i32
    %86 = arith.index_cast %85 : i32 to index
    %c0_27 = arith.constant 0 : index
    %87 = vector.load %arg9[%86, %c0_27] : memref<64x128xf32, #tpu.memory_space<vmem>>, vector<8x128xf32>
    %cst_28 = arith.constant dense<0.000000e+00> : vector<8x128xf32>
    %88 = tpu.matmul %81, %7, %cst_28 {dimension_numbers = #tpu.dot_dimension_numbers<[1], [0], [0], [1], [0, 0, 1, 1], [], []>} : vector<8x32xf32>, vector<32x128xf32>, vector<8x128xf32> -> vector<8x128xf32>
    %89 = arith.addf %87, %88 : vector<8x128xf32>
    %90 = arith.negf %89 : vector<8x128xf32>
    %91 = math.exp %90 : vector<8x128xf32>
    %cst_29 = arith.constant 1.000000e+00 : f32
    %92 = vector.broadcast %cst_29 : f32 to vector<8x128xf32>
    %93 = arith.addf %92, %91 : vector<8x128xf32>
    %94 = arith.divf %92, %93 : vector<8x128xf32>
    %95 = vector.extract_strided_slice %94 {offsets = [0, 0], sizes = [8, 32], strides = [1, 1]} : vector<8x128xf32> to vector<8x32xf32>
    %96 = vector.extract_strided_slice %94 {offsets = [0, 32], sizes = [8, 32], strides = [1, 1]} : vector<8x128xf32> to vector<8x32xf32>
    %97 = vector.extract_strided_slice %87 {offsets = [0, 64], sizes = [8, 32], strides = [1, 1]} : vector<8x128xf32> to vector<8x32xf32>
    %98 = vector.extract_strided_slice %88 {offsets = [0, 64], sizes = [8, 32], strides = [1, 1]} : vector<8x128xf32> to vector<8x32xf32>
    %99 = arith.addf %98, %10 : vector<8x32xf32>
    %100 = arith.mulf %95, %99 : vector<8x32xf32>
    %101 = arith.addf %97, %100 : vector<8x32xf32>
    %102 = math.tanh %101 : vector<8x32xf32>
    %103 = arith.subf %81, %102 : vector<8x32xf32>
    %104 = arith.mulf %96, %103 : vector<8x32xf32>
    %105 = arith.addf %102, %104 : vector<8x32xf32>
    %106 = arith.index_cast %85 : i32 to index
    %c0_30 = arith.constant 0 : index
    %107 = vector.load %arg10[%106, %c0_30] : memref<64x32xf32, #tpu.memory_space<vmem>>, vector<8x32xf32>
    tpu.vector_store %arg10[%106, %c0_30], %105 {strides = array<i32>} : memref<64x32xf32, #tpu.memory_space<vmem>>, vector<8x32xf32>,
    %c4_i32 = arith.constant 4 : i32
    %c8_i32_31 = arith.constant 8 : i32
    %108 = arith.muli %c4_i32, %c8_i32_31 : i32
    %109 = tpu.assume_multiple %108, 8 : i32
    %110 = arith.index_cast %109 : i32 to index
    %c0_32 = arith.constant 0 : index
    %111 = vector.load %arg9[%110, %c0_32] : memref<64x128xf32, #tpu.memory_space<vmem>>, vector<8x128xf32>
    %cst_33 = arith.constant dense<0.000000e+00> : vector<8x128xf32>
    %112 = tpu.matmul %105, %7, %cst_33 {dimension_numbers = #tpu.dot_dimension_numbers<[1], [0], [0], [1], [0, 0, 1, 1], [], []>} : vector<8x32xf32>, vector<32x128xf32>, vector<8x128xf32> -> vector<8x128xf32>
    %113 = arith.addf %111, %112 : vector<8x128xf32>
    %114 = arith.negf %113 : vector<8x128xf32>
    %115 = math.exp %114 : vector<8x128xf32>
    %cst_34 = arith.constant 1.000000e+00 : f32
    %116 = vector.broadcast %cst_34 : f32 to vector<8x128xf32>
    %117 = arith.addf %116, %115 : vector<8x128xf32>
    %118 = arith.divf %116, %117 : vector<8x128xf32>
    %119 = vector.extract_strided_slice %118 {offsets = [0, 0], sizes = [8, 32], strides = [1, 1]} : vector<8x128xf32> to vector<8x32xf32>
    %120 = vector.extract_strided_slice %118 {offsets = [0, 32], sizes = [8, 32], strides = [1, 1]} : vector<8x128xf32> to vector<8x32xf32>
    %121 = vector.extract_strided_slice %111 {offsets = [0, 64], sizes = [8, 32], strides = [1, 1]} : vector<8x128xf32> to vector<8x32xf32>
    %122 = vector.extract_strided_slice %112 {offsets = [0, 64], sizes = [8, 32], strides = [1, 1]} : vector<8x128xf32> to vector<8x32xf32>
    %123 = arith.addf %122, %10 : vector<8x32xf32>
    %124 = arith.mulf %119, %123 : vector<8x32xf32>
    %125 = arith.addf %121, %124 : vector<8x32xf32>
    %126 = math.tanh %125 : vector<8x32xf32>
    %127 = arith.subf %105, %126 : vector<8x32xf32>
    %128 = arith.mulf %120, %127 : vector<8x32xf32>
    %129 = arith.addf %126, %128 : vector<8x32xf32>
    %130 = arith.index_cast %109 : i32 to index
    %c0_35 = arith.constant 0 : index
    %131 = vector.load %arg10[%130, %c0_35] : memref<64x32xf32, #tpu.memory_space<vmem>>, vector<8x32xf32>
    tpu.vector_store %arg10[%130, %c0_35], %129 {strides = array<i32>} : memref<64x32xf32, #tpu.memory_space<vmem>>, vector<8x32xf32>,
    %c5_i32 = arith.constant 5 : i32
    %c8_i32_36 = arith.constant 8 : i32
    %132 = arith.muli %c5_i32, %c8_i32_36 : i32
    %133 = tpu.assume_multiple %132, 8 : i32
    %134 = arith.index_cast %133 : i32 to index
    %c0_37 = arith.constant 0 : index
    %135 = vector.load %arg9[%134, %c0_37] : memref<64x128xf32, #tpu.memory_space<vmem>>, vector<8x128xf32>
    %cst_38 = arith.constant dense<0.000000e+00> : vector<8x128xf32>
    %136 = tpu.matmul %129, %7, %cst_38 {dimension_numbers = #tpu.dot_dimension_numbers<[1], [0], [0], [1], [0, 0, 1, 1], [], []>} : vector<8x32xf32>, vector<32x128xf32>, vector<8x128xf32> -> vector<8x128xf32>
    %137 = arith.addf %135, %136 : vector<8x128xf32>
    %138 = arith.negf %137 : vector<8x128xf32>
    %139 = math.exp %138 : vector<8x128xf32>
    %cst_39 = arith.constant 1.000000e+00 : f32
    %140 = vector.broadcast %cst_39 : f32 to vector<8x128xf32>
    %141 = arith.addf %140, %139 : vector<8x128xf32>
    %142 = arith.divf %140, %141 : vector<8x128xf32>
    %143 = vector.extract_strided_slice %142 {offsets = [0, 0], sizes = [8, 32], strides = [1, 1]} : vector<8x128xf32> to vector<8x32xf32>
    %144 = vector.extract_strided_slice %142 {offsets = [0, 32], sizes = [8, 32], strides = [1, 1]} : vector<8x128xf32> to vector<8x32xf32>
    %145 = vector.extract_strided_slice %135 {offsets = [0, 64], sizes = [8, 32], strides = [1, 1]} : vector<8x128xf32> to vector<8x32xf32>
    %146 = vector.extract_strided_slice %136 {offsets = [0, 64], sizes = [8, 32], strides = [1, 1]} : vector<8x128xf32> to vector<8x32xf32>
    %147 = arith.addf %146, %10 : vector<8x32xf32>
    %148 = arith.mulf %143, %147 : vector<8x32xf32>
    %149 = arith.addf %145, %148 : vector<8x32xf32>
    %150 = math.tanh %149 : vector<8x32xf32>
    %151 = arith.subf %129, %150 : vector<8x32xf32>
    %152 = arith.mulf %144, %151 : vector<8x32xf32>
    %153 = arith.addf %150, %152 : vector<8x32xf32>
    %154 = arith.index_cast %133 : i32 to index
    %c0_40 = arith.constant 0 : index
    %155 = vector.load %arg10[%154, %c0_40] : memref<64x32xf32, #tpu.memory_space<vmem>>, vector<8x32xf32>
    tpu.vector_store %arg10[%154, %c0_40], %153 {strides = array<i32>} : memref<64x32xf32, #tpu.memory_space<vmem>>, vector<8x32xf32>,
    %c6_i32 = arith.constant 6 : i32
    %c8_i32_41 = arith.constant 8 : i32
    %156 = arith.muli %c6_i32, %c8_i32_41 : i32
    %157 = tpu.assume_multiple %156, 8 : i32
    %158 = arith.index_cast %157 : i32 to index
    %c0_42 = arith.constant 0 : index
    %159 = vector.load %arg9[%158, %c0_42] : memref<64x128xf32, #tpu.memory_space<vmem>>, vector<8x128xf32>
    %cst_43 = arith.constant dense<0.000000e+00> : vector<8x128xf32>
    %160 = tpu.matmul %153, %7, %cst_43 {dimension_numbers = #tpu.dot_dimension_numbers<[1], [0], [0], [1], [0, 0, 1, 1], [], []>} : vector<8x32xf32>, vector<32x128xf32>, vector<8x128xf32> -> vector<8x128xf32>
    %161 = arith.addf %159, %160 : vector<8x128xf32>
    %162 = arith.negf %161 : vector<8x128xf32>
    %163 = math.exp %162 : vector<8x128xf32>
    %cst_44 = arith.constant 1.000000e+00 : f32
    %164 = vector.broadcast %cst_44 : f32 to vector<8x128xf32>
    %165 = arith.addf %164, %163 : vector<8x128xf32>
    %166 = arith.divf %164, %165 : vector<8x128xf32>
    %167 = vector.extract_strided_slice %166 {offsets = [0, 0], sizes = [8, 32], strides = [1, 1]} : vector<8x128xf32> to vector<8x32xf32>
    %168 = vector.extract_strided_slice %166 {offsets = [0, 32], sizes = [8, 32], strides = [1, 1]} : vector<8x128xf32> to vector<8x32xf32>
    %169 = vector.extract_strided_slice %159 {offsets = [0, 64], sizes = [8, 32], strides = [1, 1]} : vector<8x128xf32> to vector<8x32xf32>
    %170 = vector.extract_strided_slice %160 {offsets = [0, 64], sizes = [8, 32], strides = [1, 1]} : vector<8x128xf32> to vector<8x32xf32>
    %171 = arith.addf %170, %10 : vector<8x32xf32>
    %172 = arith.mulf %167, %171 : vector<8x32xf32>
    %173 = arith.addf %169, %172 : vector<8x32xf32>
    %174 = math.tanh %173 : vector<8x32xf32>
    %175 = arith.subf %153, %174 : vector<8x32xf32>
    %176 = arith.mulf %168, %175 : vector<8x32xf32>
    %177 = arith.addf %174, %176 : vector<8x32xf32>
    %178 = arith.index_cast %157 : i32 to index
    %c0_45 = arith.constant 0 : index
    %179 = vector.load %arg10[%178, %c0_45] : memref<64x32xf32, #tpu.memory_space<vmem>>, vector<8x32xf32>
    tpu.vector_store %arg10[%178, %c0_45], %177 {strides = array<i32>} : memref<64x32xf32, #tpu.memory_space<vmem>>, vector<8x32xf32>,
    %c7_i32 = arith.constant 7 : i32
    %c8_i32_46 = arith.constant 8 : i32
    %180 = arith.muli %c7_i32, %c8_i32_46 : i32
    %181 = tpu.assume_multiple %180, 8 : i32
    %182 = arith.index_cast %181 : i32 to index
    %c0_47 = arith.constant 0 : index
    %183 = vector.load %arg9[%182, %c0_47] : memref<64x128xf32, #tpu.memory_space<vmem>>, vector<8x128xf32>
    %cst_48 = arith.constant dense<0.000000e+00> : vector<8x128xf32>
    %184 = tpu.matmul %177, %7, %cst_48 {dimension_numbers = #tpu.dot_dimension_numbers<[1], [0], [0], [1], [0, 0, 1, 1], [], []>} : vector<8x32xf32>, vector<32x128xf32>, vector<8x128xf32> -> vector<8x128xf32>
    %185 = arith.addf %183, %184 : vector<8x128xf32>
    %186 = arith.negf %185 : vector<8x128xf32>
    %187 = math.exp %186 : vector<8x128xf32>
    %cst_49 = arith.constant 1.000000e+00 : f32
    %188 = vector.broadcast %cst_49 : f32 to vector<8x128xf32>
    %189 = arith.addf %188, %187 : vector<8x128xf32>
    %190 = arith.divf %188, %189 : vector<8x128xf32>
    %191 = vector.extract_strided_slice %190 {offsets = [0, 0], sizes = [8, 32], strides = [1, 1]} : vector<8x128xf32> to vector<8x32xf32>
    %192 = vector.extract_strided_slice %190 {offsets = [0, 32], sizes = [8, 32], strides = [1, 1]} : vector<8x128xf32> to vector<8x32xf32>
    %193 = vector.extract_strided_slice %183 {offsets = [0, 64], sizes = [8, 32], strides = [1, 1]} : vector<8x128xf32> to vector<8x32xf32>
    %194 = vector.extract_strided_slice %184 {offsets = [0, 64], sizes = [8, 32], strides = [1, 1]} : vector<8x128xf32> to vector<8x32xf32>
    %195 = arith.addf %194, %10 : vector<8x32xf32>
    %196 = arith.mulf %191, %195 : vector<8x32xf32>
    %197 = arith.addf %193, %196 : vector<8x32xf32>
    %198 = math.tanh %197 : vector<8x32xf32>
    %199 = arith.subf %177, %198 : vector<8x32xf32>
    %200 = arith.mulf %192, %199 : vector<8x32xf32>
    %201 = arith.addf %198, %200 : vector<8x32xf32>
    %202 = arith.index_cast %181 : i32 to index
    %c0_50 = arith.constant 0 : index
    %203 = vector.load %arg10[%202, %c0_50] : memref<64x32xf32, #tpu.memory_space<vmem>>, vector<8x32xf32>
    tpu.vector_store %arg10[%202, %c0_50], %201 {strides = array<i32>} : memref<64x32xf32, #tpu.memory_space<vmem>>, vector<8x32xf32>,
    %c8_i32_51 = arith.constant 8 : i32
    %c0_52 = arith.constant 0 : index
    %c0_53 = arith.constant 0 : index
    %204 = vector.load %arg10[%c0_52, %c0_53] : memref<64x32xf32, #tpu.memory_space<vmem>>, vector<64x32xf32>
    %c0_54 = arith.constant 0 : index
    %c0_55 = arith.constant 0 : index
    %205 = vector.load %arg6[%c0_54, %c0_55] : memref<32x128xf32, #tpu.memory_space<vmem>>, vector<32x128xf32>
    %cst_56 = arith.constant dense<0.000000e+00> : vector<64x128xf32>
    %206 = tpu.matmul %204, %205, %cst_56 {dimension_numbers = #tpu.dot_dimension_numbers<[1], [0], [0], [1], [0, 0, 1, 1], [], []>} : vector<64x32xf32>, vector<32x128xf32>, vector<64x128xf32> -> vector<64x128xf32>
    %c0_57 = arith.constant 0 : index
    %c0_58 = arith.constant 0 : index
    %207 = vector.load %arg7[%c0_57, %c0_58] : memref<1x128xf32, #tpu.memory_space<vmem>>, vector<1x128xf32>
    %208 = vector.broadcast %207 : vector<1x128xf32> to vector<64x128xf32>
    %209 = arith.addf %206, %208 : vector<64x128xf32>
    %210 = arith.negf %209 : vector<64x128xf32>
    %211 = math.exp %210 : vector<64x128xf32>
    %cst_59 = arith.constant 1.000000e+00 : f32
    %212 = vector.broadcast %cst_59 : f32 to vector<64x128xf32>
    %213 = arith.addf %212, %211 : vector<64x128xf32>
    %214 = arith.divf %212, %213 : vector<64x128xf32>
    %c0_60 = arith.constant 0 : index
    %c0_61 = arith.constant 0 : index
    %215 = vector.load %arg8[%c0_60, %c0_61] : memref<64x128xf32, #tpu.memory_space<vmem>>, vector<64x128xf32>
    tpu.vector_store %arg8[%c0_60, %c0_61], %214 {strides = array<i32>} : memref<64x128xf32, #tpu.memory_space<vmem>>, vector<64x128xf32>,
    return
  }
  func.func @transform_0(%arg0: i32) -> (i32, i32) {
    %c0_i32 = arith.constant 0 : i32
    %c0_i32_0 = arith.constant 0 : i32
    %c0_i32_1 = arith.constant 0 : i32
    return %c0_i32, %c0_i32_0 : i32, i32
  }
  func.func @transform_1(%arg0: i32) -> (i32, i32) {
    %c0_i32 = arith.constant 0 : i32
    %c0_i32_0 = arith.constant 0 : i32
    %c0_i32_1 = arith.constant 0 : i32
    return %c0_i32, %c0_i32_0 : i32, i32
  }
  func.func @transform_2(%arg0: i32) -> (i32, i32) {
    %c0_i32 = arith.constant 0 : i32
    %c0_i32_0 = arith.constant 0 : i32
    %c0_i32_1 = arith.constant 0 : i32
    return %c0_i32, %c0_i32_0 : i32, i32
  }
  func.func @transform_3(%arg0: i32) -> (i32, i32) {
    %c0_i32 = arith.constant 0 : i32
    %c0_i32_0 = arith.constant 0 : i32
    %c0_i32_1 = arith.constant 0 : i32
    return %c0_i32, %c0_i32_0 : i32, i32
  }
  func.func @transform_4(%arg0: i32) -> (i32, i32) {
    %c0_i32 = arith.constant 0 : i32
    %c0_i32_0 = arith.constant 0 : i32
    %c0_i32_1 = arith.constant 0 : i32
    return %c0_i32, %c0_i32_0 : i32, i32
  }
  func.func @transform_5(%arg0: i32) -> (i32, i32) {
    %c0_i32 = arith.constant 0 : i32
    %c0_i32_0 = arith.constant 0 : i32
    %c0_i32_1 = arith.constant 0 : i32
    return %c0_i32, %c0_i32_0 : i32, i32
  }
  func.func @transform_6(%arg0: i32) -> (i32, i32) {
    %c0_i32 = arith.constant 0 : i32
    %c0_i32_0 = arith.constant 0 : i32
    %c0_i32_1 = arith.constant 0 : i32
    return %c0_i32, %c0_i32_0 : i32, i32
  }
  func.func @transform_7(%arg0: i32) -> (i32, i32) {
    %c0_i32 = arith.constant 0 : i32
    %c0_i32_0 = arith.constant 0 : i32
    %c0_i32_1 = arith.constant 0 : i32
    return %c0_i32, %c0_i32_0 : i32, i32
  }
}

</mosaic_0001>

<bundles_post_ra>
// kernel: tennis_gru_forward.1
= control target key start
LH: loop header
LB: loop body
LE: loop exit
PB: predicated region body
PF: predicated region fallthrough
CT: control target
= control target key end

     0   :  { %vm43_vm0 = vcmask 130048   ;;  %v1599_v6 = vmov 0.0   ;;  %vm1600_vm1 = vmmov 0   ;;  %s1601_s26 = smov 64   ;;  %s1603_s27 = smov 32   ;;  %vm192_vm2 = vcmask 261120   ;;  %s1938_s1 = inlined_call_operand.vmem [shape: f32[16,128], index: 1, kind: input, shape index: {}]   ;;  %s1939_s0 = inlined_call_operand.vmem [shape: f32[64,16], index: 0, kind: input, shape index: {}]   ;;  %s1940_s2 = inlined_call_operand.vmem [shape: f32[32,128], index: 2, kind: input, shape index: {}]   ;;  %s1941_s4 = inlined_call_operand.vmem [shape: f32[1,32], index: 4, kind: input, shape index: {}]   ;;  %s1942_s3 = inlined_call_operand.vmem [shape: f32[1,128], index: 3, kind: input, shape index: {}]   ;;  %s1943_s5 = inlined_call_operand.vmem [shape: f32[32,128], index: 5, kind: input, shape index: {}]   ;;  %s1944_s6 = inlined_call_operand.vmem [shape: f32[1,128], index: 6, kind: input, shape index: {}]   ;;  %s1945_s7 = inlined_call_operand.vmem [shape: f32[64,128], index: 7, kind: output, shape index: {}]  }
   0x1   :  { %v35_v0 = vld [vmem:[%s1938_s1 + $0x8] sm:$0xff]  ;;  %v34_v1 = vld [vmem:[%s1938_s1] sm:$0xff]  ;;  %v1660_v4 = vld [vmem:[%s1940_s2 + $0x18] sm:$0xff] }
   0x2   :  { %v30_v2 = vld [vmem:[%s1939_s0 + $0x20] sm:$0xff]  ;;  %1510 = vmatprep.subr.mxu1 %v35_v0  ;;  %v31_v3 = vld [vmem:[%s1939_s0 + $0x28] sm:$0xff]  ;;  %1386 = vmatprep.subr.mxu0 %v35_v0  ;;  %v32_v5 = vld [vmem:[%s1939_s0 + $0x30] sm:$0xff] }
   0x3   :  { %1396 = vmatprep.mubr.msk.f32.mxu1 %vm43_vm0, %v30_v2  ;;  %1512 = vmatpush3.msra.mxu1 %v35_v0  ;;  %v1670_v7 = vld [vmem:[%s1940_s2 + $0x10] sm:$0xff]  ;;  %v26_v8 = vld [vmem:[%s1939_s0] sm:$0xff]  ;;  %v33_v9 = vld [vmem:[%s1939_s0 + $0x38] sm:$0xff] }
   0x4   :  { %1511 = vmatprep.subr.mxu1 %v34_v1  ;;  %1387 = vmatpush3.msra.mxu0 %v35_v0  ;;  %v27_v10 = vld [vmem:[%s1939_s0 + $0x8] sm:$0xff]  ;;  %v1696_v12 = vld [vmem:[%s1940_s2] sm:$0xff]  ;;  %v28_v57 = vld [vmem:[%s1939_s0 + $0x10] sm:$0xff] }
   0x5   :  { %1513 = vmatpush3.msra.mxu1 %v34_v1  ;;  %1388 = vmatprep.subr.mxu0 %v34_v1  ;;  %v1687_v11 = vld [vmem:[%s1940_s2 + $0x8] sm:$0xff]  ;;  %v1291_v13 = vld [vmem:[%s1941_s4] ss:$0 sm:$0xff]  ;;  %v29_v58 = vld [vmem:[%s1939_s0 + $0x18] sm:$0xff] }
   0x6   :  { %1397 = vmatmul.mubr.msk.f32.vlgmr.msra.gmra.mxu1 %vm43_vm0, %v31_v3  ;;  %1402 = vmatprep.subr.mxu1 %v1599_v6  ;;  %v1744_v24 = vld [vmem:[%s1942_s3] ss:$0 sm:$0xff]  ;;  %s1602_s3 = smov 96  }
   0x7   :  { %1403 = vmatpush3.msra.mxu1 %v1660_v4  ;;  %1399 = vmatprep.mubr.msk.f32.mxu1 %vm43_vm0, %v32_v5 }
   0x8   :  { %1404 = vmatprep.subr.mxu1 %v1599_v6  ;;  %1389 = vmatpush3.msra.mxu0 %v34_v1 }
   0x9   :  { %1405 = vmatpush3.msra.mxu1 %v1670_v7  ;;  %1390 = vmatprep.mubr.msk.f32.mxu0 %vm43_vm0, %v26_v8 }
   0xa   :  { %1400 = vmatmul.mubr.msk.f32.gmra.mxu1 %vm43_vm0, %v33_v9  ;;  %1406 = vmatprep.subr.mxu1 %v1599_v6 }
   0xb   :  { %1391 = vmatmul.mubr.msk.f32.vlgmr.msra.gmra.mxu0 %vm43_vm0, %v27_v10  ;;  %1407 = vmatpush3.msra.mxu1 %v1687_v11 }
   0xc   :  { %1408 = vmatprep.subr.mxu1 %v1599_v6  ;;  %1410 = vmatprep.mubr.msk.f32.mxu1 %vm1600_vm1, %v1599_v6 }
   0xd   :  { %1409 = vmatpush3.msra.mxu1 %v1696_v12  ;;  %273 = vrot.lane.b32.xlu0 %v1291_v13, %s1601_s26 }
   0xe   :  { %1411 = vmatmul.mubr.f32.vlgmr.msra.gmra.mxu1 %v1599_v6  ;;  %1413 = vmatprep.subr.mxu1 %v1599_v6 }
   0xf   :  { %1414 = vmatpush3.msra.mxu1 %v1660_v4  ;;  %1421 = vmatprep.mubr.msk.f32.mxu1 %vm1600_vm1, %v1599_v6 }
  0x10   :  { %1415 = vmatprep.subr.mxu1 %v1599_v6  ;;  %1424 = vmatprep.subr.mxu0 %v1599_v6 }
  0x11   :  { %1416 = vmatpush3.msra.mxu1 %v1670_v7  ;;  %1425 = vmatpush3.msra.mxu0 %v1660_v4 }
  0x12   :  { %1417 = vmatprep.subr.mxu1 %v1599_v6  ;;  %1426 = vmatprep.subr.mxu0 %v1599_v6 }
  0x13   :  { %1418 = vmatpush3.msra.mxu1 %v1687_v11  ;;  %1427 = vmatpush3.msra.mxu0 %v1670_v7 }
  0x14   :  { %1419 = vmatprep.subr.mxu1 %v1599_v6  ;;  %1428 = vmatprep.subr.mxu0 %v1599_v6 }
  0x15   :  { %1420 = vmatpush3.msra.mxu1 %v1696_v12  ;;  %1429 = vmatpush3.msra.mxu0 %v1687_v11 }
  0x16   :  { %1430 = vmatprep.subr.mxu0 %v1599_v6  ;;  %1435 = vmatprep.subr.mxu1 %v1599_v6 }
  0x17   :  { %1431 = vmatpush3.msra.mxu0 %v1696_v12  ;;  %1393 = vmatprep.mubr.msk.f32.mxu0 %vm43_vm0, %v28_v57 }
  0x18   :  { %1446 = vmatprep.subr.mxu0 %v1599_v6  ;;  %1394 = vmatmul.mubr.msk.f32.gmra.mxu0 %vm43_vm0, %v29_v58 }
  0x19   :  { %1432 = vmatprep.mubr.msk.f32.mxu0 %vm1600_vm1, %v1599_v6 }
  0x7f   :  { %v1737_v18 = vpop.permute.xlu0 %273 }
  0xc6   :  { %v1729_v14 = vpop.f32.mrf.mxu1 }
  0xc8   :  { %v1731_v15 = vpop.f32.mrf.mxu1 }
  0xca   :  { %v1733_v16 = vpop.f32.mrf.mxu1 }
  0xcb   :  { %v1392_v22 = vpop.f32.mrf.mxu0 }
  0xcc   :  { %v1735_v17 = vpop.f32.mrf.mxu1  ;;  %v140_v45 = vadd.f32 %v1392_v22, %v1744_v24 }
  0xcd   :  { %v134_v23 = vpop.f32.mrf.mxu0 }
  0xce   :  { %v262_v19 = vpop.f32.mrf.mxu1  ;;  %v135_v25 = vadd.f32 %v1744_v24, %v134_v23 }
  0xcf   :  { %v276_v20 = vadd.f32 %v1737_v18, %v262_v19 }
  0xd0   :  { %v1412_v21 = vpop.f32.mrf.mxu1  ;;  %v266_v26 = vadd.f32 %v262_v19, %v135_v25 }
  0xd1   :  { %278 = vrot.lane.b32.xlu0 %v276_v20, %s1601_s26 }
  0xd2   :  { %v1292_v27 = vmul.f32 -1.442695, %v266_v26 }
  0xd4   :  { %1519 = vpow2.f32 %v1292_v27 }
  0xd8   :  { %v1395_v0 = vpop.f32.mrf.mxu0 }
  0xda   :  { %v144_v1 = vpop.f32.mrf.mxu0 }
  0xdb   :  { %v145_v8 = vadd.f32 %v1744_v24, %v144_v1 }
  0xe1   :  { %v1520_v28 = vpop.eup %1519 }
  0xe2   :  { %v270_v29 = vadd.f32 1.0, %v1520_v28 }
  0xe4   :  { %1521 = vrcp.f32 %v270_v29 }
  0xf1   :  { %v1522_v30 = vpop.eup %1521 }
 0x143   :  { %v279_v31 = vpop.permute.xlu0 %278 }
 0x144   :  { %v281_v32 = vmul.f32 %v1522_v30, %v279_v31 }
 0x146   :  { %283 = vrot.lane.b32.xlu1 %v281_v32, %s1601_s26 }
 0x1b8   :  { %v284_v33 = vpop.permute.xlu1 %283 }
 0x1b9   :  { %v286_v34 = vadd.f32 %v284_v33, %v135_v25 }
 0x1bb   :  { %1523 = vtanh.f32 %v286_v34 }
 0x1c8   :  { %v1524_v35 = vpop.eup %1523 }
 0x1c9   :  { %v288_v36 = vsub.f32 0.0, %v1524_v35 }
 0x1cb   :  { %290 = vrot.lane.b32.xlu1 %v288_v36, %s1602_s3  ;;  %v150_v36 = vadd.f32 %v1395_v0, %v1744_v24 }
 0x23d   :  { %v291_v37 = vpop.permute.xlu1 %290 }
 0x23e   :  { %v293_v38 = vmul.f32 %v1522_v30, %v291_v37 }
 0x240   :  { %295 = vrot.lane.b32.xlu0 %v293_v38, %s1603_s27 }
 0x2b2   :  { %v296_v39 = vpop.permute.xlu0 %295 }
 0x2b3   :  { %v298_v40 = vadd.f32 %v1524_v35, %v296_v39 }
 0x2b5   :  { %300 = vrot.lane.b32.xlu1 %v298_v40, %s1601_s26 }
 0x327   :  { %v301_v41 = vpop.permute.xlu1 %300 }
 0x328   :  { %303 = vst.msk [vmem:[#allocation3] sm:$0xff] %vm192_vm2, %v301_v41  ;;  %1422 = vmatmul.mubr.msk.f32.vlgmr.msra.gmra.mxu1 %vm192_vm2, %v301_v41 }
 0x329   :  { %1436 = vmatpush3.msra.mxu1 %v1660_v4  ;;  %1443 = vmatprep.mubr.msk.f32.mxu1 %vm1600_vm1, %v1599_v6 }
 0x32a   :  { %1437 = vmatprep.subr.mxu1 %v1599_v6 }
 0x32b   :  { %1438 = vmatpush3.msra.mxu1 %v1670_v7 }
 0x32c   :  { %1439 = vmatprep.subr.mxu1 %v1599_v6 }
 0x32d   :  { %1440 = vmatpush3.msra.mxu1 %v1687_v11 }
 0x32e   :  { %1441 = vmatprep.subr.mxu1 %v1599_v6 }
 0x32f   :  { %1442 = vmatpush3.msra.mxu1 %v1696_v12 }
 0x330   :  { %1457 = vmatprep.subr.mxu1 %v1599_v6 }
 0x3e8   :  { %v374_v42 = vpop.f32.mrf.mxu1 }
 0x3e9   :  { %v385_v43 = vadd.f32 %v374_v42, %v1737_v18  ;;  %v378_v46 = vadd.f32 %v374_v42, %v140_v45 }
 0x3ea   :  { %v1423_v44 = vpop.f32.mrf.mxu1 }
 0x3eb   :  { %387 = vrot.lane.b32.xlu0 %v385_v43, %s1601_s26  ;;  %v1294_v47 = vmul.f32 -1.442695, %v378_v46 }
 0x3ed   :  { %1525 = vpow2.f32 %v1294_v47 }
 0x3fa   :  { %v1526_v48 = vpop.eup %1525 }
 0x3fb   :  { %v382_v49 = vadd.f32 1.0, %v1526_v48 }
 0x3fd   :  { %1527 = vrcp.f32 %v382_v49 }
 0x40a   :  { %v1528_v50 = vpop.eup %1527 }
 0x45d   :  { %v388_v51 = vpop.permute.xlu0 %387 }
 0x45e   :  { %v390_v52 = vmul.f32 %v1528_v50, %v388_v51 }
 0x460   :  { %392 = vrot.lane.b32.xlu1 %v390_v52, %s1601_s26 }
 0x4d2   :  { %v393_v53 = vpop.permute.xlu1 %392 }
 0x4d3   :  { %v395_v54 = vadd.f32 %v393_v53, %v140_v45 }
 0x4d5   :  { %1529 = vtanh.f32 %v395_v54 }
 0x4e2   :  { %v1530_v55 = vpop.eup %1529 }
 0x4e3   :  { %v397_v56 = vsub.f32 %v298_v40, %v1530_v55 }
 0x4e5   :  { %399 = vrot.lane.b32.xlu0 %v397_v56, %s1602_s3  ;;  %v155_v56 = vadd.f32 %v1744_v24, %v1731_v15 }
 0x557   :  { %v400_v59 = vpop.permute.xlu0 %399 }
 0x558   :  { %v402_v60 = vmul.f32 %v1528_v50, %v400_v59 }
 0x55a   :  { %404 = vrot.lane.b32.xlu1 %v402_v60, %s1603_s27 }
 0x5cc   :  { %v405_v61 = vpop.permute.xlu1 %404 }
 0x5cd   :  { %v407_v62 = vadd.f32 %v1530_v55, %v405_v61 }
 0x5cf   :  { %409 = vrot.lane.b32.xlu0 %v407_v62, %s1601_s26 }
 0x641   :  { %v410_v63 = vpop.permute.xlu0 %409 }
 0x642   :  { %413 = vst.msk [vmem:[#allocation3 + $0x8] sm:$0xff] %vm192_vm2, %v410_v63  ;;  %1433 = vmatmul.mubr.msk.f32.vlgmr.msra.gmra.mxu0 %vm192_vm2, %v410_v63 }
 0x643   :  { %1447 = vmatpush3.msra.mxu0 %v1660_v4  ;;  %1454 = vmatprep.mubr.msk.f32.mxu0 %vm1600_vm1, %v1599_v6 }
 0x644   :  { %1448 = vmatprep.subr.mxu0 %v1599_v6 }
 0x645   :  { %1449 = vmatpush3.msra.mxu0 %v1670_v7 }
 0x646   :  { %1450 = vmatprep.subr.mxu0 %v1599_v6 }
 0x647   :  { %1451 = vmatpush3.msra.mxu0 %v1687_v11 }
 0x648   :  { %1452 = vmatprep.subr.mxu0 %v1599_v6 }
 0x649   :  { %1453 = vmatpush3.msra.mxu0 %v1696_v12 }
 0x64a   :  { %1468 = vmatprep.subr.mxu0 %v1599_v6 }
 0x702   :  { %v484_v2 = vpop.f32.mrf.mxu0 }
 0x703   :  { %v495_v3 = vadd.f32 %v484_v2, %v1737_v18  ;;  %v488_v9 = vadd.f32 %v484_v2, %v145_v8 }
 0x704   :  { %v1434_v5 = vpop.f32.mrf.mxu0 }
 0x705   :  { %497 = vrot.lane.b32.xlu1 %v495_v3, %s1601_s26  ;;  %v1296_v10 = vmul.f32 -1.442695, %v488_v9 }
 0x707   :  { %1531 = vpow2.f32 %v1296_v10 }
 0x714   :  { %v1532_v13 = vpop.eup %1531 }
 0x715   :  { %v492_v19 = vadd.f32 1.0, %v1532_v13 }
 0x717   :  { %1533 = vrcp.f32 %v492_v19 }
 0x724   :  { %v1534_v20 = vpop.eup %1533 }
 0x777   :  { %v498_v21 = vpop.permute.xlu1 %497 }
 0x778   :  { %v500_v22 = vmul.f32 %v1534_v20, %v498_v21 }
 0x77a   :  { %502 = vrot.lane.b32.xlu0 %v500_v22, %s1601_s26 }
 0x7ec   :  { %v503_v23 = vpop.permute.xlu0 %502 }
 0x7ed   :  { %v505_v25 = vadd.f32 %v503_v23, %v145_v8 }
 0x7ef   :  { %1535 = vtanh.f32 %v505_v25 }
 0x7fc   :  { %v1536_v26 = vpop.eup %1535 }
 0x7fd   :  { %v507_v27 = vsub.f32 %v407_v62, %v1536_v26 }
 0x7ff   :  { %509 = vrot.lane.b32.xlu1 %v507_v27, %s1602_s3 }
 0x871   :  { %v510_v28 = vpop.permute.xlu1 %509 }
 0x872   :  { %v512_v29 = vmul.f32 %v1534_v20, %v510_v28 }
 0x874   :  { %514 = vrot.lane.b32.xlu0 %v512_v29, %s1603_s27 }
 0x8e6   :  { %v515_v30 = vpop.permute.xlu0 %514 }
 0x8e7   :  { %v517_v31 = vadd.f32 %v1536_v26, %v515_v30 }
 0x8e9   :  { %519 = vrot.lane.b32.xlu1 %v517_v31, %s1601_s26 }
 0x95b   :  { %v520_v32 = vpop.permute.xlu1 %519 }
 0x95c   :  { %523 = vst.msk [vmem:[#allocation3 + $0x10] sm:$0xff] %vm192_vm2, %v520_v32  ;;  %1444 = vmatmul.mubr.msk.f32.vlgmr.msra.gmra.mxu1 %vm192_vm2, %v520_v32 }
 0x95d   :  { %1458 = vmatpush3.msra.mxu1 %v1660_v4  ;;  %1465 = vmatprep.mubr.msk.f32.mxu1 %vm1600_vm1, %v1599_v6 }
 0x95e   :  { %1459 = vmatprep.subr.mxu1 %v1599_v6 }
 0x95f   :  { %1460 = vmatpush3.msra.mxu1 %v1670_v7 }
 0x960   :  { %1461 = vmatprep.subr.mxu1 %v1599_v6 }
 0x961   :  { %1462 = vmatpush3.msra.mxu1 %v1687_v11 }
 0x962   :  { %1463 = vmatprep.subr.mxu1 %v1599_v6 }
 0x963   :  { %1464 = vmatpush3.msra.mxu1 %v1696_v12 }
 0x964   :  { %1479 = vmatprep.subr.mxu1 %v1599_v6 }
 0xa1c   :  { %v594_v33 = vpop.f32.mrf.mxu1 }
 0xa1d   :  { %v605_v34 = vadd.f32 %v594_v33, %v1737_v18  ;;  %v598_v37 = vadd.f32 %v594_v33, %v150_v36 }
 0xa1e   :  { %v1445_v35 = vpop.f32.mrf.mxu1 }
 0xa1f   :  { %607 = vrot.lane.b32.xlu0 %v605_v34, %s1601_s26  ;;  %v1298_v38 = vmul.f32 -1.442695, %v598_v37  ;;  %v1084_v34 = vld [vmem:[%s1943_s5 + $0x10] sm:$0xff]  ;;  %v1074_v35 = vld [vmem:[#allocation3] sm:$0xff] }
 0xa20   :  { %v1082_v37 = vld [vmem:[%s1943_s5] sm:$0xff] }
 0xa21   :  { %1537 = vpow2.f32 %v1298_v38  ;;  %v1075_v38 = vld [vmem:[#allocation3 + $0x8] sm:$0xff] }
 0xa2e   :  { %v1538_v39 = vpop.eup %1537 }
 0xa2f   :  { %v602_v40 = vadd.f32 1.0, %v1538_v39  ;;  %v1076_v39 = vld [vmem:[#allocation3 + $0x10] sm:$0xff] }
 0xa31   :  { %1539 = vrcp.f32 %v602_v40 }
 0xa3e   :  { %v1540_v41 = vpop.eup %1539 }
 0xa91   :  { %v608_v42 = vpop.permute.xlu0 %607 }
 0xa92   :  { %v610_v43 = vmul.f32 %v1540_v41, %v608_v42 }
 0xa94   :  { %612 = vrot.lane.b32.xlu1 %v610_v43, %s1601_s26 }
 0xb06   :  { %v613_v44 = vpop.permute.xlu1 %612 }
 0xb07   :  { %v615_v45 = vadd.f32 %v613_v44, %v150_v36  ;;  %v1083_v36 = vld [vmem:[%s1943_s5 + $0x8] sm:$0xff] }
 0xb09   :  { %1541 = vtanh.f32 %v615_v45 }
 0xb16   :  { %v1542_v46 = vpop.eup %1541 }
 0xb17   :  { %v617_v47 = vsub.f32 %v517_v31, %v1542_v46 }
 0xb19   :  { %619 = vrot.lane.b32.xlu0 %v617_v47, %s1602_s3 }
 0xb8b   :  { %v620_v48 = vpop.permute.xlu0 %619 }
 0xb8c   :  { %v622_v49 = vmul.f32 %v1540_v41, %v620_v48 }
 0xb8e   :  { %624 = vrot.lane.b32.xlu1 %v622_v49, %s1603_s27 }
 0xc00   :  { %v625_v50 = vpop.permute.xlu1 %624 }
 0xc01   :  { %v627_v51 = vadd.f32 %v1542_v46, %v625_v50  ;;  %v1884_v46 = vld [vmem:[%s1944_s6] ss:$0 sm:$0xff] }
 0xc03   :  { %629 = vrot.lane.b32.xlu0 %v627_v51, %s1601_s26 }
 0xc75   :  { %v630_v52 = vpop.permute.xlu0 %629 }
 0xc76   :  { %633 = vst.msk [vmem:[#allocation3 + $0x18] sm:$0xff] %vm192_vm2, %v630_v52  ;;  %1455 = vmatmul.mubr.msk.f32.vlgmr.msra.gmra.mxu0 %vm192_vm2, %v630_v52 }
 0xc77   :  { %1469 = vmatpush3.msra.mxu0 %v1660_v4  ;;  %1476 = vmatprep.mubr.msk.f32.mxu0 %vm1600_vm1, %v1599_v6 }
 0xc78   :  { %1470 = vmatprep.subr.mxu0 %v1599_v6 }
 0xc79   :  { %1471 = vmatpush3.msra.mxu0 %v1670_v7 }
 0xc7a   :  { %1472 = vmatprep.subr.mxu0 %v1599_v6 }
 0xc7b   :  { %1473 = vmatpush3.msra.mxu0 %v1687_v11 }
 0xc7c   :  { %1474 = vmatprep.subr.mxu0 %v1599_v6 }
 0xc7d   :  { %1475 = vmatpush3.msra.mxu0 %v1696_v12  ;;  %v1077_v40 = vld [vmem:[#allocation3 + $0x18] sm:$0xff] }
 0xd36   :  { %v704_v53 = vpop.f32.mrf.mxu0 }
 0xd37   :  { %v715_v54 = vadd.f32 %v704_v53, %v1737_v18  ;;  %v708_v57 = vadd.f32 %v704_v53, %v155_v56 }
 0xd38   :  { %v1456_v55 = vpop.f32.mrf.mxu0 }
 0xd39   :  { %717 = vrot.lane.b32.xlu1 %v715_v54, %s1601_s26  ;;  %v1300_v58 = vmul.f32 -1.442695, %v708_v57 }
 0xd3b   :  { %1543 = vpow2.f32 %v1300_v58 }
 0xd48   :  { %v1544_v59 = vpop.eup %1543 }
 0xd49   :  { %v712_v60 = vadd.f32 1.0, %v1544_v59 }
 0xd4b   :  { %1545 = vrcp.f32 %v712_v60 }
 0xd58   :  { %v1546_v61 = vpop.eup %1545 }
 0xdab   :  { %v718_v62 = vpop.permute.xlu1 %717 }
 0xdac   :  { %v720_v63 = vmul.f32 %v1546_v61, %v718_v62 }
 0xdae   :  { %722 = vrot.lane.b32.xlu0 %v720_v63, %s1601_s26 }
 0xe20   :  { %v723_v0 = vpop.permute.xlu0 %722 }
 0xe21   :  { %v725_v1 = vadd.f32 %v723_v0, %v155_v56 }
 0xe23   :  { %1547 = vtanh.f32 %v725_v1 }
 0xe30   :  { %v1548_v2 = vpop.eup %1547 }
 0xe31   :  { %v727_v3 = vsub.f32 %v627_v51, %v1548_v2 }
 0xe33   :  { %729 = vrot.lane.b32.xlu1 %v727_v3, %s1602_s3 }
 0xea5   :  { %v730_v5 = vpop.permute.xlu1 %729 }
 0xea6   :  { %v732_v15 = vmul.f32 %v1546_v61, %v730_v5 }
 0xea8   :  { %734 = vrot.lane.b32.xlu0 %v732_v15, %s1603_s27 }
 0xf1a   :  { %v735_v8 = vpop.permute.xlu0 %734 }
 0xf1b   :  { %v737_v9 = vadd.f32 %v1548_v2, %v735_v8 }
 0xf1d   :  { %739 = vrot.lane.b32.xlu1 %v737_v9, %s1601_s26 }
 0xf8f   :  { %v740_v10 = vpop.permute.xlu1 %739 }
 0xf90   :  { %743 = vst.msk [vmem:[#allocation3 + $0x20] sm:$0xff] %vm192_vm2, %v740_v10  ;;  %1466 = vmatmul.mubr.msk.f32.vlgmr.msra.gmra.mxu1 %vm192_vm2, %v740_v10 }
 0xf91   :  { %1480 = vmatpush3.msra.mxu1 %v1660_v4  ;;  %1487 = vmatprep.mubr.msk.f32.mxu1 %vm1600_vm1, %v1599_v6  ;;  %v160_v4 = vadd.f32 %v1729_v14, %v1744_v24  ;;  %v1085_v14 = vld [vmem:[%s1943_s5 + $0x18] sm:$0xff] }
 0xf92   :  { %1481 = vmatprep.subr.mxu1 %v1599_v6  ;;  %1490 = vmatprep.subr.mxu0 %v1085_v14 }
 0xf93   :  { %1482 = vmatpush3.msra.mxu1 %v1670_v7 }
 0xf94   :  { %1483 = vmatprep.subr.mxu1 %v1599_v6 }
 0xf95   :  { %1484 = vmatpush3.msra.mxu1 %v1687_v11 }
 0xf96   :  { %1485 = vmatprep.subr.mxu1 %v1599_v6 }
 0xf97   :  { %1486 = vmatpush3.msra.mxu1 %v1696_v12  ;;  %v1078_v41 = vld [vmem:[#allocation3 + $0x20] sm:$0xff] }
0x1050   :  { %v814_v13 = vpop.f32.mrf.mxu1 }
0x1051   :  { %v825_v19 = vadd.f32 %v814_v13, %v1737_v18  ;;  %v818_v21 = vadd.f32 %v814_v13, %v160_v4 }
0x1052   :  { %v1467_v20 = vpop.f32.mrf.mxu1 }
0x1053   :  { %827 = vrot.lane.b32.xlu0 %v825_v19, %s1601_s26  ;;  %v1302_v22 = vmul.f32 -1.442695, %v818_v21 }
0x1055   :  { %1549 = vpow2.f32 %v1302_v22 }
0x1062   :  { %v1550_v7 = vpop.eup %1549 }
0x1063   :  { %v822_v23 = vadd.f32 1.0, %v1550_v7 }
0x1065   :  { %1551 = vrcp.f32 %v822_v23 }
0x1072   :  { %v1552_v11 = vpop.eup %1551 }
0x10c5   :  { %v828_v25 = vpop.permute.xlu0 %827 }
0x10c6   :  { %v830_v6 = vmul.f32 %v1552_v11, %v828_v25 }
0x10c8   :  { %832 = vrot.lane.b32.xlu1 %v830_v6, %s1601_s26  ;;  %v165_v6 = vadd.f32 %v1744_v24, %v1735_v17 }
0x113a   :  { %v833_v12 = vpop.permute.xlu1 %832 }
0x113b   :  { %v835_v26 = vadd.f32 %v833_v12, %v160_v4 }
0x113d   :  { %1553 = vtanh.f32 %v835_v26 }
0x114a   :  { %v1554_v27 = vpop.eup %1553 }
0x114b   :  { %v837_v28 = vsub.f32 %v737_v9, %v1554_v27 }
0x114d   :  { %839 = vrot.lane.b32.xlu0 %v837_v28, %s1602_s3 }
0x11bf   :  { %v840_v29 = vpop.permute.xlu0 %839 }
0x11c0   :  { %v842_v30 = vmul.f32 %v1552_v11, %v840_v29 }
0x11c2   :  { %844 = vrot.lane.b32.xlu1 %v842_v30, %s1603_s27 }
0x1234   :  { %v845_v31 = vpop.permute.xlu1 %844 }
0x1235   :  { %v1858_v32 = vadd.f32 %v1554_v27, %v845_v31 }
0x1237   :  { %849 = vrot.lane.b32.xlu0 %v1858_v32, %s1601_s26 }
0x12a9   :  { %v850_v33 = vpop.permute.xlu0 %849 }
0x12aa   :  { %853 = vst.msk [vmem:[#allocation3 + $0x28] sm:$0xff] %vm192_vm2, %v850_v33  ;;  %1477 = vmatmul.mubr.msk.f32.vlgmr.msra.gmra.mxu0 %vm192_vm2, %v850_v33 }
0x12ab   :  { %1491 = vmatpush3.msra.mxu0 %v1085_v14  ;;  %1498 = vmatprep.mubr.msk.f32.mxu0 %vm192_vm2, %v1074_v35 }
0x12ac   :  { %1492 = vmatprep.subr.mxu0 %v1084_v34 }
0x12ad   :  { %1493 = vmatpush3.msra.mxu0 %v1084_v34 }
0x12ae   :  { %1494 = vmatprep.subr.mxu0 %v1083_v36 }
0x12af   :  { %1495 = vmatpush3.msra.mxu0 %v1083_v36 }
0x12b0   :  { %1496 = vmatprep.subr.mxu0 %v1082_v37 }
0x12b1   :  { %1497 = vmatpush3.msra.mxu0 %v1082_v37  ;;  %v1079_v42 = vld [vmem:[#allocation3 + $0x28] sm:$0xff] }
0x12b2   :  { %1499 = vmatmul.mubr.msk.f32.vlgmr.msra.gmra.mxu0 %vm192_vm2, %v1075_v38 }
0x12b3   :  { %1501 = vmatprep.mubr.msk.f32.mxu0 %vm192_vm2, %v1076_v39 }
0x12b6   :  { %1502 = vmatmul.mubr.msk.f32.gmra.mxu0 %vm192_vm2, %v1077_v40 }
0x12b7   :  { %1504 = vmatprep.mubr.msk.f32.mxu0 %vm192_vm2, %v1078_v41 }
0x12ba   :  { %1505 = vmatmul.mubr.msk.f32.gmra.mxu0 %vm192_vm2, %v1079_v42 }
0x136a   :  { %v924_v43 = vpop.f32.mrf.mxu0 }
0x136b   :  { %v935_v44 = vadd.f32 %v924_v43, %v1737_v18  ;;  %v928_v12 = vadd.f32 %v924_v43, %v165_v6  ;;  %v170_v43 = vadd.f32 %v1733_v16, %v1744_v24 }
0x136c   :  { %v1478_v45 = vpop.f32.mrf.mxu0 }
0x136d   :  { %937 = vrot.lane.b32.xlu1 %v935_v44, %s1601_s26  ;;  %v1304_v26 = vmul.f32 -1.442695, %v928_v12 }
0x1372   :  { %v1500_v47 = vpop.f32.mrf.mxu0 }
0x1373   :  { %v1189_v48 = vadd.f32 %v1500_v47, %v1884_v46 }
0x1374   :  { %v1183_v49 = vpop.f32.mrf.mxu0 }
0x1375   :  { %v1317_v50 = vmul.f32 -1.442695, %v1189_v48  ;;  %v1184_v51 = vadd.f32 %v1884_v46, %v1183_v49 }
0x1376   :  { %v1503_v52 = vpop.f32.mrf.mxu0 }
0x1377   :  { %1555 = vpow2.f32 %v1317_v50  ;;  %v1316_v53 = vmul.f32 -1.442695, %v1184_v51  ;;  %v1199_v54 = vadd.f32 %v1503_v52, %v1884_v46 }
0x1378   :  { %v1193_v55 = vpop.f32.mrf.mxu0 }
0x1379   :  { %1557 = vpow2.f32 %v1316_v53  ;;  %v1319_v56 = vmul.f32 -1.442695, %v1199_v54  ;;  %v1194_v57 = vadd.f32 %v1884_v46, %v1193_v55 }
0x137a   :  { %v1506_v58 = vpop.f32.mrf.mxu0 }
0x137b   :  { %1559 = vpow2.f32 %v1319_v56  ;;  %v1318_v59 = vmul.f32 -1.442695, %v1194_v57  ;;  %v1209_v60 = vadd.f32 %v1506_v58, %v1884_v46 }
0x137c   :  { %v1203_v61 = vpop.f32.mrf.mxu0 }
0x137d   :  { %1561 = vpow2.f32 %v1318_v59  ;;  %v1321_v62 = vmul.f32 -1.442695, %v1209_v60  ;;  %v1204_v63 = vadd.f32 %v1884_v46, %v1203_v61 }
0x137f   :  { %v1320_v0 = vmul.f32 -1.442695, %v1204_v63  ;;  %1563 = vpow2.f32 %v1321_v62 }
0x1381   :  { %1565 = vpow2.f32 %v1320_v0 }
0x1384   :  { %v1556_v1 = vpop.eup %1555 }
0x1385   :  { %v1247_v2 = vadd.f32 1.0, %v1556_v1 }
0x1386   :  { %v1558_v3 = vpop.eup %1557 }
0x1387   :  { %1567 = vrcp.f32 %v1247_v2  ;;  %v1246_v5 = vadd.f32 1.0, %v1558_v3 }
0x1388   :  { %v1560_v15 = vpop.eup %1559 }
0x1389   :  { %1569 = vrcp.f32 %v1246_v5  ;;  %v1249_v8 = vadd.f32 1.0, %v1560_v15 }
0x138a   :  { %v1562_v9 = vpop.eup %1561 }
0x138b   :  { %1571 = vrcp.f32 %v1249_v8  ;;  %v1248_v10 = vadd.f32 1.0, %v1562_v9 }
0x138c   :  { %v1564_v13 = vpop.eup %1563 }
0x138d   :  { %1573 = vrcp.f32 %v1248_v10  ;;  %v1251_v20 = vadd.f32 1.0, %v1564_v13 }
0x138e   :  { %v1566_v19 = vpop.eup %1565 }
0x138f   :  { %v1250_v4 = vadd.f32 1.0, %v1566_v19  ;;  %1575 = vrcp.f32 %v1251_v20 }
0x1391   :  { %1577 = vrcp.f32 %v1250_v4 }
0x1392   :  { %1579 = vpow2.f32 %v1304_v26 }
0x1394   :  { %v1568_v21 = vpop.eup %1567 }
0x1395   :  { %1271 = vst [vmem:[%s1945_s7 + $0x8] sm:$0xff] %v1568_v21 }
0x1396   :  { %v1570_v22 = vpop.eup %1569 }
0x1397   :  { %1270 = vst [vmem:[%s1945_s7] sm:$0xff] %v1570_v22 }
0x1398   :  { %v1572_v7 = vpop.eup %1571 }
0x1399   :  { %1273 = vst [vmem:[%s1945_s7 + $0x18] sm:$0xff] %v1572_v7 }
0x139a   :  { %v1574_v23 = vpop.eup %1573 }
0x139b   :  { %1272 = vst [vmem:[%s1945_s7 + $0x10] sm:$0xff] %v1574_v23 }
0x139c   :  { %v1576_v11 = vpop.eup %1575 }
0x139d   :  { %1275 = vst [vmem:[%s1945_s7 + $0x28] sm:$0xff] %v1576_v11 }
0x139e   :  { %v1578_v25 = vpop.eup %1577 }
0x139f   :  { %1274 = vst [vmem:[%s1945_s7 + $0x20] sm:$0xff] %v1578_v25  ;;  %v1580_v27 = vpop.eup %1579 }
0x13a0   :  { %v932_v28 = vadd.f32 1.0, %v1580_v27 }
0x13a2   :  { %1581 = vrcp.f32 %v932_v28 }
0x13af   :  { %v1582_v14 = vpop.eup %1581 }
0x13df   :  { %v938_v29 = vpop.permute.xlu1 %937 }
0x13e0   :  { %v940_v30 = vmul.f32 %v1582_v14, %v938_v29 }
0x13e2   :  { %942 = vrot.lane.b32.xlu0 %v940_v30, %s1601_s26 }
0x1454   :  { %v943_v31 = vpop.permute.xlu0 %942 }
0x1455   :  { %v945_v33 = vadd.f32 %v943_v31, %v165_v6 }
0x1457   :  { %1583 = vtanh.f32 %v945_v33 }
0x1464   :  { %v1584_v34 = vpop.eup %1583 }
0x1465   :  { %v947_v35 = vsub.f32 %v1858_v32, %v1584_v34 }
0x1467   :  { %949 = vrot.lane.b32.xlu1 %v947_v35, %s1602_s3 }
0x14d9   :  { %v950_v17 = vpop.permute.xlu1 %949 }
0x14da   :  { %v952_v36 = vmul.f32 %v1582_v14, %v950_v17 }
0x14dc   :  { %954 = vrot.lane.b32.xlu0 %v952_v36, %s1603_s27 }
0x154e   :  { %v955_v37 = vpop.permute.xlu0 %954 }
0x154f   :  { %v957_v38 = vadd.f32 %v1584_v34, %v955_v37 }
0x1551   :  { %959 = vrot.lane.b32.xlu1 %v957_v38, %s1601_s26 }
0x15c3   :  { %v960_v39 = vpop.permute.xlu1 %959 }
0x15c4   :  { %963 = vst.msk [vmem:[#allocation3 + $0x30] sm:$0xff] %vm192_vm2, %v960_v39  ;;  %1488 = vmatmul.mubr.msk.f32.vlgmr.msra.gmra.mxu1 %vm192_vm2, %v960_v39 }
0x15cb   :  { %v1080_v40 = vld [vmem:[#allocation3 + $0x30] sm:$0xff] }
0x15cc   :  { %1507 = vmatprep.mubr.msk.f32.mxu0 %vm192_vm2, %v1080_v40 }
0x1684   :  { %v1034_v41 = vpop.f32.mrf.mxu1 }
0x1685   :  { %v1045_v32 = vadd.f32 %v1034_v41, %v1737_v18  ;;  %v1038_v44 = vadd.f32 %v1034_v41, %v170_v43 }
0x1686   :  { %v1489_v42 = vpop.f32.mrf.mxu1 }
0x1687   :  { %1047 = vrot.lane.b32.xlu0 %v1045_v32, %s1601_s26  ;;  %v1306_v45 = vmul.f32 -1.442695, %v1038_v44 }
0x1689   :  { %1585 = vpow2.f32 %v1306_v45 }
0x1696   :  { %v1586_v47 = vpop.eup %1585 }
0x1697   :  { %v1042_v48 = vadd.f32 1.0, %v1586_v47 }
0x1699   :  { %1587 = vrcp.f32 %v1042_v48 }
0x16a6   :  { %v1588_v49 = vpop.eup %1587 }
0x16f9   :  { %v1048_v50 = vpop.permute.xlu0 %1047 }
0x16fa   :  { %v1050_v51 = vmul.f32 %v1588_v49, %v1048_v50 }
0x16fc   :  { %1052 = vrot.lane.b32.xlu1 %v1050_v51, %s1601_s26 }
0x176e   :  { %v1053_v52 = vpop.permute.xlu1 %1052 }
0x176f   :  { %v1055_v53 = vadd.f32 %v1053_v52, %v170_v43 }
0x1771   :  { %1589 = vtanh.f32 %v1055_v53 }
0x177e   :  { %v1590_v18 = vpop.eup %1589 }
0x177f   :  { %v1057_v54 = vsub.f32 %v957_v38, %v1590_v18 }
0x1781   :  { %1059 = vrot.lane.b32.xlu0 %v1057_v54, %s1602_s3 }
0x17f3   :  { %v1060_v55 = vpop.permute.xlu0 %1059 }
0x17f4   :  { %v1062_v16 = vmul.f32 %v1588_v49, %v1060_v55 }
0x17f6   :  { %1064 = vrot.lane.b32.xlu1 %v1062_v16, %s1603_s27 }
0x1868   :  { %v1065_v24 = vpop.permute.xlu1 %1064 }
0x1869   :  { %v1067_v56 = vadd.f32 %v1590_v18, %v1065_v24 }
0x186b   :  { %1069 = vrot.lane.b32.xlu0 %v1067_v56, %s1601_s26 }
0x18dd   :  { %v1070_v57 = vpop.permute.xlu0 %1069 }
0x18de   :  { %1073 = vst.msk [vmem:[#allocation3 + $0x38] sm:$0xff] %vm192_vm2, %v1070_v57 }
0x18e5   :  { %v1081_v58 = vld [vmem:[#allocation3 + $0x38] sm:$0xff] }
0x18e6   :  { %1508 = vmatmul.mubr.msk.f32.gmra.mxu0 %vm192_vm2, %v1081_v58 }
0x19a6   :  { %v1509_v59 = vpop.f32.mrf.mxu0 }
0x19a7   :  { %v1219_v60 = vadd.f32 %v1509_v59, %v1884_v46 }
0x19a8   :  { %v1213_v61 = vpop.f32.mrf.mxu0 }
0x19a9   :  { %v1323_v62 = vmul.f32 -1.442695, %v1219_v60  ;;  %v1214_v63 = vadd.f32 %v1884_v46, %v1213_v61 }
0x19ab   :  { %1591 = vpow2.f32 %v1323_v62  ;;  %v1322_v0 = vmul.f32 -1.442695, %v1214_v63 }
0x19ad   :  { %1593 = vpow2.f32 %v1322_v0 }
0x19b8   :  { %v1592_v1 = vpop.eup %1591 }
0x19b9   :  { %v1253_v2 = vadd.f32 1.0, %v1592_v1 }
0x19ba   :  { %v1594_v3 = vpop.eup %1593 }
0x19bb   :  { %1595 = vrcp.f32 %v1253_v2  ;;  %v1252_v5 = vadd.f32 1.0, %v1594_v3 }
0x19bd   :  { %1597 = vrcp.f32 %v1252_v5 }
0x19c8   :  { %v1596_v15 = vpop.eup %1595 }
0x19c9   :  { %1277 = vst [vmem:[%s1945_s7 + $0x38] sm:$0xff] %v1596_v15 }
0x19ca   :  { %v1598_v8 = vpop.eup %1597 }
0x19cb   :  { %1276 = vst [vmem:[%s1945_s7 + $0x30] sm:$0xff] %v1598_v8 }

</bundles_post_ra>
